<compile_context>
chip_gen: v6e
topology: v6e:2x2x1
jax: 0.10.0
libtpu: 0.0.40
codegen_flags: <defaults>
</compile_context>

<pallas_src>
import jax
import jax.numpy as jnp
from jax.experimental import pallas as pl
from jax.experimental.pallas import tpu as pltpu


def _round_up(x, m):
    return (x + m - 1) // m * m


def _actor_kernel(x_ref, w1_ref, b1_ref, w2_ref, b2_ref,
                  w3_ref, b3_ref, w4_ref, b4_ref, out_ref):
    bf = jnp.bfloat16
    # Layer 1: Linear(state_dim, 256) + ReLU.  x cast to bf16 in-kernel (VPU has
    # slack); the K=state_dim contraction is padded in-register by Mosaic.
    h = jnp.dot(x_ref[...].astype(bf), w1_ref[...],
                preferred_element_type=jnp.float32) + b1_ref[...]
    h = jnp.maximum(h, 0.0)
    # Layer 2: Linear(256, 256) + ReLU
    h = jnp.dot(h.astype(bf), w2_ref[...],
                preferred_element_type=jnp.float32) + b2_ref[...]
    h = jnp.maximum(h, 0.0)
    # Layer 3: Linear(256, 256) + ReLU
    h = jnp.dot(h.astype(bf), w3_ref[...],
                preferred_element_type=jnp.float32) + b3_ref[...]
    h = jnp.maximum(h, 0.0)
    # Layer 4: Linear(256, action_dim) + Tanh, stored directly at action_dim lanes.
    h = jnp.dot(h.astype(bf), w4_ref[...],
                preferred_element_type=jnp.float32) + b4_ref[...]
    out_ref[...] = jnp.tanh(h).astype(out_ref.dtype)


def _choose_batch_tile(B, tile_b):
    """Batch tile: multiple of 8 sublanes, <= tile_b, and >=2 grid steps when B>=16."""
    tile_b = max(8, _round_up(tile_b, 8))          # robust vs. tile_b % 8 != 0
    TB = min(tile_b, _round_up(B, 8))
    if B >= 16:                                    # let v7x's 2 TCs both get work
        TB = min(TB, _round_up(pl.cdiv(B, 2), 8))
    return max(8, _round_up(TB, 8))


def actor_forward(x, params, *, tile_b=4096):
    """x: (B, state_dim) float32. params: f32 dict of (in,out) weights + (1,out) biases."""
    B, state_dim = x.shape
    hidden = params["w1"].shape[1]
    action_dim = params["w4"].shape[1]

    TB = _choose_batch_tile(B, tile_b)
    grid_b = pl.cdiv(B, TB)

    bf = jnp.bfloat16
    w1 = params["w1"].astype(bf)
    w2 = params["w2"].astype(bf)
    w3 = params["w3"].astype(bf)
    w4 = params["w4"].astype(bf)
    b1 = params["b1"].astype(jnp.float32)
    b2 = params["b2"].astype(jnp.float32)
    b3 = params["b3"].astype(jnp.float32)
    b4 = params["b4"].astype(jnp.float32)

    tile_map = lambda i: (i, 0)       # x / out tiles walk the batch axis
    const_map = lambda i: (0, 0)      # weights & biases stay VMEM-resident

    w_elems = w1.size + w2.size + w3.size + w4.size
    b_elems = b1.size + b2.size + b3.size + b4.size
    flops = 2 * B * (state_dim * hidden + 2 * hidden * hidden + hidden * action_dim)
    bytes_accessed = x.size * 4 + w_elems * 2 + b_elems * 4 + B * action_dim * 4

    # Scoped-VMEM budget with headroom (v5e defaults to only 16 MiB scoped).
    vmem_est = (2 * TB * state_dim * 4            # double-buffered x tiles (f32)
                + 2 * TB * action_dim * 4         # double-buffered out tiles (f32)
                + 2 * 2 * w_elems                 # bf16 weights x 2 buffers
                + 2 * 4 * b_elems                 # f32 biases  x 2 buffers
                + 4 * TB * hidden * 4)            # live f32/bf16 hidden intermediates
    vmem_limit = int(min(max(2 * vmem_est, 32 * 1024 * 1024), 48 * 1024 * 1024))

    out = pl.pallas_call(
        _actor_kernel,
        out_shape=jax.ShapeDtypeStruct((B, action_dim), jnp.float32),
        grid_spec=pltpu.PrefetchScalarGridSpec(
            num_scalar_prefetch=0,
            grid=(grid_b,),
            in_specs=[
                pl.BlockSpec((TB, state_dim), tile_map),
                pl.BlockSpec(w1.shape, const_map),
                pl.BlockSpec(b1.shape, const_map),
                pl.BlockSpec(w2.shape, const_map),
                pl.BlockSpec(b2.shape, const_map),
                pl.BlockSpec(w3.shape, const_map),
                pl.BlockSpec(b3.shape, const_map),
                pl.BlockSpec(w4.shape, const_map),
                pl.BlockSpec(b4.shape, const_map),
            ],
            out_specs=pl.BlockSpec((TB, action_dim), tile_map),
        ),
        compiler_params=pltpu.CompilerParams(
            dimension_semantics=("parallel",),
            vmem_limit_bytes=vmem_limit),
        cost_estimate=pl.CostEstimate(
            flops=flops,
            transcendentals=B * action_dim,
            bytes_accessed=bytes_accessed),
    )(x, w1, b1, w2, b2, w3, b3, w4, b4)
    return out


def init_actor_params(key, state_dim, action_dim, hidden=256):
    """Deterministic init mimicking PyTorch nn.Linear default (U(-1/sqrt(fan_in), ..))."""
    dims = [(state_dim, hidden), (hidden, hidden), (hidden, hidden), (hidden, action_dim)]
    params = {}
    for i, (fan_in, fan_out) in enumerate(dims, start=1):
        key, kw, kb = jax.random.split(key, 3)
        bound = 1.0 / jnp.sqrt(fan_in)
        params[f"w{i}"] = jax.random.uniform(
            kw, (fan_in, fan_out), jnp.float32, minval=-bound, maxval=bound)
        params[f"b{i}"] = jax.random.uniform(
            kb, (1, fan_out), jnp.float32, minval=-bound, maxval=bound)
    return params


def actor_forward_ref_f32(x, p):
    h = jnp.maximum(x @ p["w1"] + p["b1"], 0.0)
    h = jnp.maximum(h @ p["w2"] + p["b2"], 0.0)
    h = jnp.maximum(h @ p["w3"] + p["b3"], 0.0)
    return jnp.tanh(h @ p["w4"] + p["b4"])


def actor_forward_ref_bf16(x, p):
    """Reference matching the kernel's mixed precision (bf16 matmul inputs, f32 accum)."""
    bf = jnp.bfloat16
    h = jnp.dot(x.astype(bf), p["w1"].astype(bf),
                preferred_element_type=jnp.float32) + p["b1"]
    h = jnp.maximum(h, 0.0)
    h = jnp.dot(h.astype(bf), p["w2"].astype(bf),
                preferred_element_type=jnp.float32) + p["b2"]
    h = jnp.maximum(h, 0.0)
    h = jnp.dot(h.astype(bf), p["w3"].astype(bf),
                preferred_element_type=jnp.float32) + p["b3"]
    h = jnp.maximum(h, 0.0)
    h = jnp.dot(h.astype(bf), p["w4"].astype(bf),
                preferred_element_type=jnp.float32) + p["b4"]
    return jnp.tanh(h)


if __name__ == "__main__":
    # Small shapes consistent with an Ant-v3-style actor: state_dim=28, action_dim=8.
    batch, state_dim, action_dim = 8, 28, 8

    key = jax.random.PRNGKey(0)
    key, kx = jax.random.split(key)
    x = jax.random.normal(kx, (batch, state_dim), dtype=jnp.float32)
    params = init_actor_params(key, state_dim, action_dim)

    out = jax.block_until_ready(actor_forward(x, params))
    assert out.shape == (batch, action_dim)

    ref_bf16 = actor_forward_ref_bf16(x, params)
    assert jnp.allclose(out, ref_bf16, atol=5e-3, rtol=5e-3), \
        "mismatch vs bf16-matched reference"
    ref_f32 = actor_forward_ref_f32(x, params)
    assert jnp.allclose(out, ref_f32, atol=6e-2), "mismatch vs f32 reference"

    # Larger, non-multiple batch: default tile -> TB=504, grid=2 (v7x split) with
    # a ragged last block; then tile_b=250 -> rounded to 256, 4-step grid.
    xb = jax.random.normal(jax.random.PRNGKey(1), (1000, state_dim), jnp.float32)
    refb = actor_forward_ref_bf16(xb, params)

    outb = jax.block_until_ready(actor_forward(xb, params))
    assert outb.shape == (1000, action_dim)
    assert jnp.allclose(outb, refb, atol=5e-3, rtol=5e-3), "mismatch on batched path"

    outc = jax.block_until_ready(actor_forward(xb, params, tile_b=250))
    assert outc.shape == (1000, action_dim)
    assert jnp.allclose(outc, refb, atol=5e-3, rtol=5e-3), "mismatch on small-tile path"

    print("KERNEL_OK")
</pallas_src>

<mosaic_0001>
module attributes {stable_mosaic.version = 11 : i64} {
  func.func @_actor_kernel(%arg0: i32, %arg1: memref<8x28xf32, #tpu.memory_space<vmem>>, %arg2: memref<28x256xbf16, #tpu.memory_space<vmem>>, %arg3: memref<1x256xf32, #tpu.memory_space<vmem>>, %arg4: memref<256x256xbf16, #tpu.memory_space<vmem>>, %arg5: memref<1x256xf32, #tpu.memory_space<vmem>>, %arg6: memref<256x256xbf16, #tpu.memory_space<vmem>>, %arg7: memref<1x256xf32, #tpu.memory_space<vmem>>, %arg8: memref<256x8xbf16, #tpu.memory_space<vmem>>, %arg9: memref<1x8xf32, #tpu.memory_space<vmem>>, %arg10: memref<8x8xf32, #tpu.memory_space<vmem>>) attributes {dimension_semantics = [#tpu.dimension_semantics<parallel>], iteration_bounds = array<i64: 1>, scalar_prefetch = 0 : i64, scratch_operands = 0 : i64, tpu.core_type = #tpu.core_type<tc>, window_params = [{transform_indices = @transform_0, window_bounds = array<i64: 8, 28>}, {pipeline_mode = #tpu.pipeline_mode<synchronous>, transform_indices = @transform_1, window_bounds = array<i64: 28, 256>}, {pipeline_mode = #tpu.pipeline_mode<synchronous>, transform_indices = @transform_2, window_bounds = array<i64: 1, 256>}, {pipeline_mode = #tpu.pipeline_mode<synchronous>, transform_indices = @transform_3, window_bounds = array<i64: 256, 256>}, {pipeline_mode = #tpu.pipeline_mode<synchronous>, transform_indices = @transform_4, window_bounds = array<i64: 1, 256>}, {pipeline_mode = #tpu.pipeline_mode<synchronous>, transform_indices = @transform_5, window_bounds = array<i64: 256, 256>}, {pipeline_mode = #tpu.pipeline_mode<synchronous>, transform_indices = @transform_6, window_bounds = array<i64: 1, 256>}, {pipeline_mode = #tpu.pipeline_mode<synchronous>, transform_indices = @transform_7, window_bounds = array<i64: 256, 8>}, {pipeline_mode = #tpu.pipeline_mode<synchronous>, transform_indices = @transform_8, window_bounds = array<i64: 1, 8>}, {transform_indices = @transform_9, window_bounds = array<i64: 8, 8>}]} {
    %c0 = arith.constant 0 : index
    %c0_0 = arith.constant 0 : index
    %0 = vector.load %arg1[%c0, %c0_0] : memref<8x28xf32, #tpu.memory_space<vmem>>, vector<8x28xf32>
    %1 = arith.truncf %0 : vector<8x28xf32> to vector<8x28xbf16>
    %c0_1 = arith.constant 0 : index
    %c0_2 = arith.constant 0 : index
    %2 = vector.load %arg2[%c0_1, %c0_2] : memref<28x256xbf16, #tpu.memory_space<vmem>>, vector<28x256xbf16>
    %cst = arith.constant dense<0.000000e+00> : vector<8x256xf32>
    %3 = tpu.matmul %1, %2, %cst {dimension_numbers = #tpu.dot_dimension_numbers<[1], [0], [0], [1], [0, 0, 1, 1], [], []>} : vector<8x28xbf16>, vector<28x256xbf16>, vector<8x256xf32> -> vector<8x256xf32>
    %c0_3 = arith.constant 0 : index
    %c0_4 = arith.constant 0 : index
    %4 = vector.load %arg3[%c0_3, %c0_4] : memref<1x256xf32, #tpu.memory_space<vmem>>, vector<1x256xf32>
    %5 = vector.broadcast %4 : vector<1x256xf32> to vector<8x256xf32>
    %6 = arith.addf %3, %5 : vector<8x256xf32>
    %cst_5 = arith.constant 0.000000e+00 : f32
    %7 = vector.broadcast %cst_5 : f32 to vector<8x256xf32>
    %8 = arith.maximumf %6, %7 : vector<8x256xf32>
    %9 = arith.truncf %8 : vector<8x256xf32> to vector<8x256xbf16>
    %c0_6 = arith.constant 0 : index
    %c0_7 = arith.constant 0 : index
    %10 = vector.load %arg4[%c0_6, %c0_7] : memref<256x256xbf16, #tpu.memory_space<vmem>>, vector<256x256xbf16>
    %cst_8 = arith.constant dense<0.000000e+00> : vector<8x256xf32>
    %11 = tpu.matmul %9, %10, %cst_8 {dimension_numbers = #tpu.dot_dimension_numbers<[1], [0], [0], [1], [0, 0, 1, 1], [], []>} : vector<8x256xbf16>, vector<256x256xbf16>, vector<8x256xf32> -> vector<8x256xf32>
    %c0_9 = arith.constant 0 : index
    %c0_10 = arith.constant 0 : index
    %12 = vector.load %arg5[%c0_9, %c0_10] : memref<1x256xf32, #tpu.memory_space<vmem>>, vector<1x256xf32>
    %13 = vector.broadcast %12 : vector<1x256xf32> to vector<8x256xf32>
    %14 = arith.addf %11, %13 : vector<8x256xf32>
    %cst_11 = arith.constant 0.000000e+00 : f32
    %15 = vector.broadcast %cst_11 : f32 to vector<8x256xf32>
    %16 = arith.maximumf %14, %15 : vector<8x256xf32>
    %17 = arith.truncf %16 : vector<8x256xf32> to vector<8x256xbf16>
    %c0_12 = arith.constant 0 : index
    %c0_13 = arith.constant 0 : index
    %18 = vector.load %arg6[%c0_12, %c0_13] : memref<256x256xbf16, #tpu.memory_space<vmem>>, vector<256x256xbf16>
    %cst_14 = arith.constant dense<0.000000e+00> : vector<8x256xf32>
    %19 = tpu.matmul %17, %18, %cst_14 {dimension_numbers = #tpu.dot_dimension_numbers<[1], [0], [0], [1], [0, 0, 1, 1], [], []>} : vector<8x256xbf16>, vector<256x256xbf16>, vector<8x256xf32> -> vector<8x256xf32>
    %c0_15 = arith.constant 0 : index
    %c0_16 = arith.constant 0 : index
    %20 = vector.load %arg7[%c0_15, %c0_16] : memref<1x256xf32, #tpu.memory_space<vmem>>, vector<1x256xf32>
    %21 = vector.broadcast %20 : vector<1x256xf32> to vector<8x256xf32>
    %22 = arith.addf %19, %21 : vector<8x256xf32>
    %cst_17 = arith.constant 0.000000e+00 : f32
    %23 = vector.broadcast %cst_17 : f32 to vector<8x256xf32>
    %24 = arith.maximumf %22, %23 : vector<8x256xf32>
    %25 = arith.truncf %24 : vector<8x256xf32> to vector<8x256xbf16>
    %c0_18 = arith.constant 0 : index
    %c0_19 = arith.constant 0 : index
    %26 = vector.load %arg8[%c0_18, %c0_19] : memref<256x8xbf16, #tpu.memory_space<vmem>>, vector<256x8xbf16>
    %cst_20 = arith.constant dense<0.000000e+00> : vector<8x8xf32>
    %27 = tpu.matmul %25, %26, %cst_20 {dimension_numbers = #tpu.dot_dimension_numbers<[1], [0], [0], [1], [0, 0, 1, 1], [], []>} : vector<8x256xbf16>, vector<256x8xbf16>, vector<8x8xf32> -> vector<8x8xf32>
    %c0_21 = arith.constant 0 : index
    %c0_22 = arith.constant 0 : index
    %28 = vector.load %arg9[%c0_21, %c0_22] : memref<1x8xf32, #tpu.memory_space<vmem>>, vector<1x8xf32>
    %29 = vector.broadcast %28 : vector<1x8xf32> to vector<8x8xf32>
    %30 = arith.addf %27, %29 : vector<8x8xf32>
    %31 = math.tanh %30 : vector<8x8xf32>
    %c0_23 = arith.constant 0 : index
    %c0_24 = arith.constant 0 : index
    %32 = vector.load %arg10[%c0_23, %c0_24] : memref<8x8xf32, #tpu.memory_space<vmem>>, vector<8x8xf32>
    tpu.vector_store %arg10[%c0_23, %c0_24], %31 {strides = array<i32>} : memref<8x8xf32, #tpu.memory_space<vmem>>, vector<8x8xf32>,
    return
  }
  func.func @transform_0(%arg0: i32) -> (i32, i32) {
    %c0_i32 = arith.constant 0 : i32
    %c0_i32_0 = arith.constant 0 : i32
    return %arg0, %c0_i32 : i32, i32
  }
  func.func @transform_1(%arg0: i32) -> (i32, i32) {
    %c0_i32 = arith.constant 0 : i32
    %c0_i32_0 = arith.constant 0 : i32
    %c0_i32_1 = arith.constant 0 : i32
    return %c0_i32, %c0_i32_0 : i32, i32
  }
  func.func @transform_2(%arg0: i32) -> (i32, i32) {
    %c0_i32 = arith.constant 0 : i32
    %c0_i32_0 = arith.constant 0 : i32
    %c0_i32_1 = arith.constant 0 : i32
    return %c0_i32, %c0_i32_0 : i32, i32
  }
  func.func @transform_3(%arg0: i32) -> (i32, i32) {
    %c0_i32 = arith.constant 0 : i32
    %c0_i32_0 = arith.constant 0 : i32
    %c0_i32_1 = arith.constant 0 : i32
    return %c0_i32, %c0_i32_0 : i32, i32
  }
  func.func @transform_4(%arg0: i32) -> (i32, i32) {
    %c0_i32 = arith.constant 0 : i32
    %c0_i32_0 = arith.constant 0 : i32
    %c0_i32_1 = arith.constant 0 : i32
    return %c0_i32, %c0_i32_0 : i32, i32
  }
  func.func @transform_5(%arg0: i32) -> (i32, i32) {
    %c0_i32 = arith.constant 0 : i32
    %c0_i32_0 = arith.constant 0 : i32
    %c0_i32_1 = arith.constant 0 : i32
    return %c0_i32, %c0_i32_0 : i32, i32
  }
  func.func @transform_6(%arg0: i32) -> (i32, i32) {
    %c0_i32 = arith.constant 0 : i32
    %c0_i32_0 = arith.constant 0 : i32
    %c0_i32_1 = arith.constant 0 : i32
    return %c0_i32, %c0_i32_0 : i32, i32
  }
  func.func @transform_7(%arg0: i32) -> (i32, i32) {
    %c0_i32 = arith.constant 0 : i32
    %c0_i32_0 = arith.constant 0 : i32
    %c0_i32_1 = arith.constant 0 : i32
    return %c0_i32, %c0_i32_0 : i32, i32
  }
  func.func @transform_8(%arg0: i32) -> (i32, i32) {
    %c0_i32 = arith.constant 0 : i32
    %c0_i32_0 = arith.constant 0 : i32
    %c0_i32_1 = arith.constant 0 : i32
    return %c0_i32, %c0_i32_0 : i32, i32
  }
  func.func @transform_9(%arg0: i32) -> (i32, i32) {
    %c0_i32 = arith.constant 0 : i32
    %c0_i32_0 = arith.constant 0 : i32
    return %arg0, %c0_i32 : i32, i32
  }
}

</mosaic_0001>

<bundles_post_ra>
// kernel: tpu_custom_call.1
= control target key start
LH: loop header
LB: loop body
LE: loop exit
PB: predicated region body
PF: predicated region fallthrough
CT: control target
= control target key end

     0   :  { %14 = vsyncpa [#allocation3], 0  ;;  %s1297_s0 = inlined_call_operand.vmem [shape: f32[8,28], index: 0, kind: input, shape index: {}]   ;;  %s1298_s1 = inlined_call_operand.vmem [shape: bf16[28,256], index: 1, kind: input, shape index: {}]   ;;  %s1299_s2 = inlined_call_operand.vmem [shape: f32[1,256], index: 2, kind: input, shape index: {}]   ;;  %s1300_s3 = inlined_call_operand.hbm [shape: bf16[256,256], index: 3, kind: input, shape index: {}]   ;;  %s1301_s4 = inlined_call_operand.vmem [shape: f32[1,256], index: 4, kind: input, shape index: {}]   ;;  %s1302_s5 = inlined_call_operand.hbm [shape: bf16[256,256], index: 5, kind: input, shape index: {}]   ;;  %s1303_s6 = inlined_call_operand.vmem [shape: f32[1,256], index: 6, kind: input, shape index: {}]   ;;  %s1304_s7 = inlined_call_operand.vmem [shape: bf16[256,8], index: 7, kind: input, shape index: {}]   ;;  %s1305_s8 = inlined_call_operand.vmem [shape: f32[1,8], index: 8, kind: input, shape index: {}]   ;;  %s1306_s9 = inlined_call_operand.hbm [shape: f32[8,8], index: 9, kind: output, shape index: {}]  }
   0x1   :  { %15 = vsyncpa [#allocation6], 0 }
   0x2   :  { %16 = vsyncpa [#allocation4], 0  ;;  %s1147_s30 = smov [#allocation2]  }
   0x3   :  { %s28_s10 = sshll.u32 %s1147_s30, 4  ;;  %s29_s10 = int_to_ptr.vmem [resolvable:$true] %s28_s10 }
   0x4   :  { %s1089_s11 = scalar_lea.vmem %s29_s10, 4096  ;;  %p1094_p1 = scmp.lt.s32.totalorder %s29_s10, %s29_s10 }
   0x5   :  { %p1090_p0 = scmp.ne.s32.totalorder %s29_s10, %s1089_s11  ;;  %p1095_p2 = scmp.lt.s32.totalorder %s1089_s11, %s1089_s11 }
   0x7   :  { %p1096_p3 = por %p1095_p2, %p1094_p1 }
   0x9   :  { %p1097_p4 = pnand %p1096_p3, %p1090_p0 }
   0xb   :  { %1100 = shalt.err (!%p1097_p4)
}
   0xc   :  { %s1148_s12 = smov 128   ;;  %s1149_s13 = smov 8  }
   0xd   :  { %34 = dma.hbm_to_vmem [thread:$0]  %s1300_s3, 4096, %s29_s10, [#allocation3], %s1148_s12, %s1148_s12, %s1149_s13  }
   0xe   :  { %s1150_s16 = smov [#allocation5]  }
   0xf   :  { %s42_s17 = sshll.u32 %s1150_s16, 4  ;;  %s43_s17 = int_to_ptr.vmem [resolvable:$true] %s42_s17 }
  0x10   :  { %s1109_s18 = scalar_lea.vmem %s43_s17, 4096  ;;  %p1114_p6 = scmp.lt.s32.totalorder %s43_s17, %s43_s17 }
  0x11   :  { %p1110_p5 = scmp.ne.s32.totalorder %s43_s17, %s1109_s18  ;;  %p1115_p7 = scmp.lt.s32.totalorder %s1109_s18, %s1109_s18 }
  0x13   :  { %p1116_p8 = por %p1115_p7, %p1114_p6 }
  0x15   :  { %p1117_p9 = pnand %p1116_p8, %p1110_p5 }
  0x17   :  { %1120 = shalt.err (!%p1117_p9)
}
  0x18   :  { %48 = dma.hbm_to_vmem [thread:$0]  %s1302_s5, 4096, %s43_s17, [#allocation6], %s1148_s12, %s1148_s12, %s1149_s13  }
  0x19   :  { %1141 = dma.done.wait [#allocation3], 4096  }
  0x1a   :  { %1142 = vsyncadd [#allocation3], 4294963200 }
  0x1b   :  { %1143 = dma.done.wait [#allocation6], 4096  }
  0x1c   :  { %1144 = vsyncadd [#allocation6], 4294963200  ;;  %v1151_v0 = vmov 0   ;;  %vm102_vm0 = vcmask 1045504   ;;  %v964_v3 = vld [vmem:[%s1298_s1 + $0x4] ss:$8 sps:$4 sm:$0xff]  }
  0x1d   :  { %141 = vmatprep.mubr.bf16.mxu0 %v1151_v0  ;;  %v961_v1 = vld [vmem:[%s1298_s1 + $0x14] ss:$8 sps:$4 sm:$0x3f]   ;;  %v963_v2 = vld [vmem:[%s1298_s1 + $0x10] ss:$8 sps:$4 sm:$0x3f]  }
  0x1e   :  { %850 = vmatprep.subr.msk.bf16.mxu0 %vm102_vm0, %v961_v1  ;;  %v966_v4 = vld [vmem:[%s1298_s1] ss:$8 sps:$4 sm:$0xff]   ;;  %v104_v6 = vsel %vm102_vm0, %v963_v2, 0  ;;  %v967_v7 = vld [vmem:[#allocation2 + $0x74] ss:$8 sps:$4 sm:$0xff]   ;;  %vm98_vm1 = vcmask 228352  }
  0x1f   :  { %v62_v5 = vld [vmem:[%s1297_s0] sm:$0xff]  ;;  %122 = vmatpush1.bf16.msra.mxu0 %v104_v6  ;;  %v969_v8 = vld [vmem:[#allocation2 + $0x70] ss:$8 sps:$4 sm:$0xff]   ;;  %358 = vmatprep.subr.bf16.mxu1 %v967_v7  ;;  %v973_v12 = vld [vmem:[#allocation2 + $0x54] ss:$8 sps:$4 sm:$0xff]   ;;  %vm828_vm2 = vcmask 64512  }
  0x20   :  { %123 = vmatprep.subr.bf16.mxu0 %v964_v3  ;;  %v970_v9 = vld [vmem:[#allocation2 + $0x64] ss:$8 sps:$4 sm:$0xff]   ;;  %359 = vmatpush1.bf16.msra.mxu1 %v969_v8  ;;  %v972_v10 = vld [vmem:[#allocation2 + $0x60] ss:$8 sps:$4 sm:$0xff]   ;;  %v63_v11 = vpack.c.bf16 %v62_v5, %v62_v5  ;;  %v975_v13 = vld [vmem:[#allocation2 + $0x50] ss:$8 sps:$4 sm:$0xff]  }
  0x21   :  { %360 = vmatprep.subr.bf16.mxu1 %v970_v9  ;;  %v976_v14 = vld [vmem:[#allocation2 + $0x44] ss:$8 sps:$4 sm:$0xff]   ;;  %v978_v15 = vld [vmem:[#allocation2 + $0x40] ss:$8 sps:$4 sm:$0xff]   ;;  %v979_v16 = vld [vmem:[#allocation2 + $0x34] ss:$8 sps:$4 sm:$0xff]  }
  0x22   :  { %v981_v17 = vld [vmem:[#allocation2 + $0x30] ss:$8 sps:$4 sm:$0xff]   ;;  %v982_v18 = vld [vmem:[#allocation2 + $0x24] ss:$8 sps:$4 sm:$0xff]   ;;  %v984_v19 = vld [vmem:[#allocation2 + $0x20] ss:$8 sps:$4 sm:$0xff]  }
  0x23   :  { %124 = vmatpush1.bf16.msra.mxu0 %v966_v4  ;;  %v985_v20 = vld [vmem:[#allocation2 + $0x14] ss:$8 sps:$4 sm:$0xff]   ;;  %v987_v21 = vld [vmem:[#allocation2 + $0x10] ss:$8 sps:$4 sm:$0xff]   ;;  %v988_v22 = vld [vmem:[#allocation2 + $0x4] ss:$8 sps:$4 sm:$0xff]   ;;  %v70_v4 = vlaneseq }
  0x24   :  { %361 = vmatpush1.bf16.msra.mxu1 %v972_v10  ;;  %v990_v23 = vld [vmem:[#allocation2] ss:$8 sps:$4 sm:$0xff]   ;;  %v991_v24 = vld [vmem:[#allocation2 + $0xf4] ss:$8 sps:$4 sm:$0xff]   ;;  %v993_v25 = vld [vmem:[#allocation2 + $0xf0] ss:$8 sps:$4 sm:$0xff]  }
  0x25   :  { %362 = vmatprep.subr.bf16.mxu1 %v973_v12  ;;  %v994_v26 = vld [vmem:[#allocation2 + $0xe4] ss:$8 sps:$4 sm:$0xff]   ;;  %v996_v27 = vld [vmem:[#allocation2 + $0xe0] ss:$8 sps:$4 sm:$0xff]   ;;  %v997_v28 = vld [vmem:[#allocation2 + $0xd4] ss:$8 sps:$4 sm:$0xff]  }
  0x26   :  { %851 = vmatmul.mubr.msk.bf16.vlgmr.msra.gmra.mxu0 %vm98_vm1, %v63_v11  ;;  %v999_v29 = vld [vmem:[#allocation2 + $0xd0] ss:$8 sps:$4 sm:$0xff]   ;;  %v1000_v30 = vld [vmem:[#allocation2 + $0xc4] ss:$8 sps:$4 sm:$0xff]   ;;  %v1002_v31 = vld [vmem:[#allocation2 + $0xc0] ss:$8 sps:$4 sm:$0xff]  }
  0x27   :  { %v1003_v32 = vld [vmem:[#allocation2 + $0xb4] ss:$8 sps:$4 sm:$0xff]   ;;  %v1005_v33 = vld [vmem:[#allocation2 + $0xb0] ss:$8 sps:$4 sm:$0xff]   ;;  %v1006_v34 = vld [vmem:[#allocation2 + $0xa4] ss:$8 sps:$4 sm:$0xff]  }
  0x28   :  { %363 = vmatpush1.bf16.msra.mxu1 %v975_v13  ;;  %v1008_v35 = vld [vmem:[#allocation2 + $0xa0] ss:$8 sps:$4 sm:$0xff]   ;;  %v1009_v36 = vld [vmem:[#allocation2 + $0x94] ss:$8 sps:$4 sm:$0xff]   ;;  %v1011_v37 = vld [vmem:[#allocation2 + $0x90] ss:$8 sps:$4 sm:$0xff]  }
  0x29   :  { %364 = vmatprep.subr.bf16.mxu1 %v976_v14  ;;  %v1012_v38 = vld [vmem:[#allocation2 + $0x84] ss:$8 sps:$4 sm:$0xff]   ;;  %v1014_v39 = vld [vmem:[#allocation2 + $0x80] ss:$8 sps:$4 sm:$0xff]   ;;  %v1015_v40 = vld [vmem:[#allocation5 + $0x70] ss:$8 sps:$4 sm:$0xff]  }
  0x2a   :  { %v1017_v41 = vld [vmem:[#allocation5 + $0x74] ss:$8 sps:$4 sm:$0xff]   ;;  %v1020_v42 = vld [vmem:[#allocation5 + $0x64] ss:$8 sps:$4 sm:$0xff]   ;;  %v1018_v43 = vld [vmem:[#allocation5 + $0x60] ss:$8 sps:$4 sm:$0xff]  }
  0x2b   :  { %607 = vmatprep.subr.bf16.mxu0 %v1017_v41  ;;  %v1023_v44 = vld [vmem:[#allocation5 + $0x54] ss:$8 sps:$4 sm:$0xff]   ;;  %v1021_v45 = vld [vmem:[#allocation5 + $0x50] ss:$8 sps:$4 sm:$0xff]   ;;  %v1026_v46 = vld [vmem:[#allocation5 + $0x44] ss:$8 sps:$4 sm:$0xff]  }
  0x2c   :  { %365 = vmatpush1.bf16.msra.mxu1 %v978_v15  ;;  %608 = vmatpush1.bf16.msra.mxu0 %v1015_v40  ;;  %v1024_v47 = vld [vmem:[#allocation5 + $0x40] ss:$8 sps:$4 sm:$0xff]   ;;  %v1029_v48 = vld [vmem:[#allocation5 + $0x34] ss:$8 sps:$4 sm:$0xff]   ;;  %v1027_v49 = vld [vmem:[#allocation5 + $0x30] ss:$8 sps:$4 sm:$0xff]  }
  0x2d   :  { %366 = vmatprep.subr.bf16.mxu1 %v979_v16  ;;  %609 = vmatprep.subr.bf16.mxu0 %v1020_v42  ;;  %v1032_v50 = vld [vmem:[#allocation5 + $0x24] ss:$8 sps:$4 sm:$0xff]   ;;  %v1030_v51 = vld [vmem:[#allocation5 + $0x20] ss:$8 sps:$4 sm:$0xff]   ;;  %v1035_v52 = vld [vmem:[#allocation5 + $0x14] ss:$8 sps:$4 sm:$0xff]  }
  0x2e   :  { %v1033_v53 = vld [vmem:[#allocation5 + $0x10] ss:$8 sps:$4 sm:$0xff]   ;;  %v1038_v54 = vld [vmem:[#allocation5 + $0x4] ss:$8 sps:$4 sm:$0xff]   ;;  %v1036_v55 = vld [vmem:[#allocation5] ss:$8 sps:$4 sm:$0xff]  }
  0x2f   :  { %v1041_v56 = vld [vmem:[#allocation5 + $0xf4] ss:$8 sps:$4 sm:$0xff]   ;;  %v1039_v57 = vld [vmem:[#allocation5 + $0xf0] ss:$8 sps:$4 sm:$0xff]   ;;  %v1044_v58 = vld [vmem:[#allocation5 + $0xe4] ss:$8 sps:$4 sm:$0xff]  }
  0x30   :  { %367 = vmatpush1.bf16.msra.mxu1 %v981_v17  ;;  %610 = vmatpush1.bf16.msra.mxu0 %v1018_v43  ;;  %v1042_v59 = vld [vmem:[#allocation5 + $0xe0] ss:$8 sps:$4 sm:$0xff]   ;;  %v1047_v60 = vld [vmem:[#allocation5 + $0xd4] ss:$8 sps:$4 sm:$0xff]   ;;  %v1045_v61 = vld [vmem:[#allocation5 + $0xd0] ss:$8 sps:$4 sm:$0xff]  }
  0x31   :  { %368 = vmatprep.subr.bf16.mxu1 %v982_v18  ;;  %611 = vmatprep.subr.bf16.mxu0 %v1023_v44  ;;  %v1050_v62 = vld [vmem:[#allocation5 + $0xc4] ss:$8 sps:$4 sm:$0xff]   ;;  %v1048_v63 = vld [vmem:[#allocation5 + $0xc0] ss:$8 sps:$4 sm:$0xff]   ;;  %v1053_v0 = vld [vmem:[#allocation5 + $0xb4] ss:$8 sps:$4 sm:$0xff]  }
  0x32   :  { %v1051_v1 = vld [vmem:[#allocation5 + $0xb0] ss:$8 sps:$4 sm:$0xff]   ;;  %v1056_v2 = vld [vmem:[#allocation5 + $0xa4] ss:$8 sps:$4 sm:$0xff]   ;;  %v1054_v3 = vld [vmem:[#allocation5 + $0xa0] ss:$8 sps:$4 sm:$0xff]  }
  0x33   :  { %v71_v5 = vshrl.u32 %v70_v4, 7  ;;  %v68_v7 = vld [vmem:[%s1299_s2] sm:$0x3] }
  0x34   :  { %369 = vmatpush1.bf16.msra.mxu1 %v984_v19  ;;  %612 = vmatpush1.bf16.msra.mxu0 %v1021_v45  ;;  %v916_v4 = vld [vmem:[%s1305_s8] ss:$0 sm:$0xff] }
  0x35   :  { %370 = vmatprep.subr.bf16.mxu1 %v985_v20  ;;  %613 = vmatprep.subr.bf16.mxu0 %v1026_v46  ;;  %v1224_v6 = vsub.s32 0, %v71_v5  ;;  %v1229_v8 = vsub.s32 1, %v71_v5 }
  0x37   :  { %v73_v9 = vrot.slane %v68_v7, %v1224_v6  ;;  %v77_v10 = vrot.slane %v68_v7, %v1229_v8 }
  0x38   :  { %371 = vmatpush1.bf16.msra.mxu1 %v987_v21  ;;  %614 = vmatpush1.bf16.msra.mxu0 %v1024_v47  ;;  %v1059_v21 = vld [vmem:[#allocation5 + $0x94] ss:$8 sps:$4 sm:$0xff]  }
  0x39   :  { %372 = vmatprep.subr.bf16.mxu1 %v988_v22  ;;  %615 = vmatprep.subr.bf16.mxu0 %v1029_v48  ;;  %v1057_v22 = vld [vmem:[#allocation5 + $0x90] ss:$8 sps:$4 sm:$0xff]  }
  0x3c   :  { %373 = vmatpush1.bf16.msra.mxu1 %v990_v23  ;;  %616 = vmatpush1.bf16.msra.mxu0 %v1027_v49  ;;  %v1062_v23 = vld [vmem:[#allocation5 + $0x84] ss:$8 sps:$4 sm:$0xff]  }
  0x3d   :  { %374 = vmatprep.subr.bf16.mxu1 %v991_v24  ;;  %617 = vmatprep.subr.bf16.mxu0 %v1032_v50  ;;  %v1060_v24 = vld [vmem:[#allocation5 + $0x80] ss:$8 sps:$4 sm:$0xff]  }
  0x3e   :  { %v1075_v50 = vld [vmem:[%s1304_s7 + $0x48] sm:$0xff]  }
  0x40   :  { %375 = vmatpush2.bf16.msra.mxu1 %v993_v25  ;;  %618 = vmatpush1.bf16.msra.mxu0 %v1030_v51  ;;  %v1063_v25 = vld [vmem:[%s1304_s7 + $0x78] sm:$0xff]   ;;  %v1076_v51 = vld [vmem:[%s1304_s7 + $0x8] sm:$0xff]  }
  0x41   :  { %376 = vmatprep.subr.bf16.mxu1 %v994_v26  ;;  %619 = vmatprep.subr.bf16.mxu0 %v1035_v52  ;;  %v1064_v26 = vld [vmem:[%s1304_s7 + $0x38] sm:$0xff]   ;;  %v1077_v52 = vld [vmem:[%s1304_s7 + $0x40] sm:$0xff]  }
  0x44   :  { %377 = vmatpush2.bf16.msra.mxu1 %v996_v27  ;;  %620 = vmatpush1.bf16.msra.mxu0 %v1033_v53  ;;  %v1065_v27 = vld [vmem:[%s1304_s7 + $0x70] sm:$0xff]   ;;  %v1078_v53 = vld [vmem:[%s1304_s7] sm:$0xff]  }
  0x45   :  { %378 = vmatprep.subr.bf16.mxu1 %v997_v28  ;;  %621 = vmatprep.subr.bf16.mxu0 %v1038_v54  ;;  %v1066_v28 = vld [vmem:[%s1304_s7 + $0x30] sm:$0xff]   ;;  %v435_v54 = vld [vmem:[%s1303_s6] sm:$0x3]  ;;  %s1152_s6 = smov [#allocation7]  }
  0x46   :  { %s836_s17 = sshll.u32 %s1152_s6, 4  ;;  %s837_s17 = int_to_ptr.vmem [resolvable:$true] %s836_s17 }
  0x47   :  { %s1121_s18 = scalar_lea.vmem %s837_s17, 128  ;;  %p1126_p11 = scmp.lt.s32.totalorder %s837_s17, %s837_s17 }
  0x48   :  { %379 = vmatpush2.bf16.msra.mxu1 %v999_v29  ;;  %622 = vmatpush1.bf16.msra.mxu0 %v1036_v55  ;;  %v1067_v29 = vld [vmem:[%s1304_s7 + $0x68] sm:$0xff]   ;;  %v440_v55 = vrot.slane %v435_v54, %v1224_v6  ;;  %p1122_p10 = scmp.ne.s32.totalorder %s837_s17, %s1121_s18  ;;  %p1127_p12 = scmp.lt.s32.totalorder %s1121_s18, %s1121_s18 }
  0x49   :  { %380 = vmatprep.subr.bf16.mxu1 %v1000_v30  ;;  %623 = vmatprep.subr.bf16.mxu0 %v1041_v56  ;;  %v1068_v30 = vld [vmem:[%s1304_s7 + $0x28] sm:$0xff]   ;;  %v444_v56 = vrot.slane %v435_v54, %v1229_v8 }
  0x4a   :  { %p1128_p13 = por %p1127_p12, %p1126_p11 }
  0x4c   :  { %381 = vmatpush2.bf16.msra.mxu1 %v1002_v31  ;;  %624 = vmatpush2.bf16.msra.mxu0 %v1039_v57  ;;  %v1069_v31 = vld [vmem:[%s1304_s7 + $0x60] sm:$0xff]   ;;  %p1129_p0 = pnand %p1128_p13, %p1122_p10 }
  0x4d   :  { %382 = vmatprep.subr.bf16.mxu1 %v1003_v32  ;;  %625 = vmatprep.subr.bf16.mxu0 %v1044_v58  ;;  %v1070_v32 = vld [vmem:[%s1304_s7 + $0x20] sm:$0xff]  }
  0x50   :  { %383 = vmatpush2.bf16.msra.mxu1 %v1005_v33  ;;  %626 = vmatpush2.bf16.msra.mxu0 %v1042_v59  ;;  %v1071_v33 = vld [vmem:[%s1304_s7 + $0x58] sm:$0xff]  }
  0x51   :  { %384 = vmatprep.subr.bf16.mxu1 %v1006_v34  ;;  %627 = vmatprep.subr.bf16.mxu0 %v1047_v60  ;;  %v1072_v34 = vld [vmem:[%s1304_s7 + $0x18] sm:$0xff]  }
  0x54   :  { %385 = vmatpush2.bf16.msra.mxu1 %v1008_v35  ;;  %628 = vmatpush2.bf16.msra.mxu0 %v1045_v61  ;;  %v1073_v35 = vld [vmem:[%s1304_s7 + $0x50] sm:$0xff]  }
  0x55   :  { %386 = vmatprep.subr.bf16.mxu1 %v1009_v36  ;;  %629 = vmatprep.subr.bf16.mxu0 %v1050_v62  ;;  %v1074_v36 = vld [vmem:[%s1304_s7 + $0x10] sm:$0xff]  }
  0x58   :  { %387 = vmatpush2.bf16.msra.mxu1 %v1011_v37  ;;  %630 = vmatpush2.bf16.msra.mxu0 %v1048_v63  ;;  %v186_v37 = vld [vmem:[%s1301_s4] sm:$0x3] }
  0x59   :  { %388 = vmatprep.subr.bf16.mxu1 %v1012_v38  ;;  %631 = vmatprep.subr.bf16.mxu0 %v1053_v0  ;;  %v191_v38 = vrot.slane %v186_v37, %v1224_v6 }
  0x5c   :  { %389 = vmatpush2.bf16.msra.mxu1 %v1014_v39  ;;  %632 = vmatpush2.bf16.msra.mxu0 %v1051_v1  ;;  %v195_v39 = vrot.slane %v186_v37, %v1229_v8 }
  0x5d   :  { %633 = vmatprep.subr.bf16.mxu0 %v1056_v2  ;;  %933 = vmatprep.subr.bf16.mxu1 %v1063_v25 }
  0x60   :  { %634 = vmatpush2.bf16.msra.mxu0 %v1054_v3 }
  0x61   :  { %635 = vmatprep.subr.bf16.mxu0 %v1059_v21 }
  0x64   :  { %636 = vmatpush2.bf16.msra.mxu0 %v1057_v22 }
  0x65   :  { %637 = vmatprep.subr.bf16.mxu0 %v1062_v23 }
  0x68   :  { %638 = vmatpush2.bf16.msra.mxu0 %v1060_v24 }
  0xe6   :  { %v143_v11 = vpop.f32.mrf.mxu0 }
  0xe7   :  { %v144_v12 = vadd.f32 %v143_v11, %v73_v9 }
  0xe8   :  { %v145_v13 = vpop.f32.mrf.mxu0 }
  0xe9   :  { %v146_v14 = vadd.f32 %v145_v13, %v77_v10  ;;  %v150_v15 = vmax.f32 %v144_v12, 0.0 }
  0xea   :  { %v147_v16 = vpop.f32.mrf.mxu0 }
  0xeb   :  { %v151_v17 = vmax.f32 %v146_v14, 0.0  ;;  %v152_v20 = vpack.c.bf16 %v150_v15, %v150_v15 }
  0xec   :  { %v148_v18 = vpop.f32.mrf.mxu0 }
  0xed   :  { %v153_v19 = vpack.c.bf16 %v151_v17, %v151_v17 }
  0xef   :  { %390 = vmatprep.mubr.bf16.mxu1 %v153_v19 }
  0xf0   :  { %391 = vmatmul.mubr.bf16.vlgmr.msra.gmra.mxu1 %v152_v20 }
  0xf1   :  { %934 = vmatpush3.bf16.msra.mxu1 %v1064_v26 }
  0xf2   :  { %935 = vmatprep.subr.bf16.mxu1 %v1065_v27 }
  0xf5   :  { %936 = vmatpush3.bf16.msra.mxu1 %v1066_v28 }
  0xf6   :  { %937 = vmatprep.subr.bf16.mxu1 %v1067_v29 }
  0xf9   :  { %938 = vmatpush3.bf16.msra.mxu1 %v1068_v30 }
  0xfa   :  { %939 = vmatprep.subr.bf16.mxu1 %v1069_v31 }
  0xfd   :  { %940 = vmatpush3.bf16.msra.mxu1 %v1070_v32 }
  0xfe   :  { %941 = vmatprep.subr.bf16.mxu1 %v1071_v33 }
 0x101   :  { %942 = vmatpush3.bf16.msra.mxu1 %v1072_v34 }
 0x102   :  { %943 = vmatprep.subr.bf16.mxu1 %v1073_v35 }
 0x105   :  { %944 = vmatpush3.bf16.msra.mxu1 %v1074_v36 }
 0x106   :  { %945 = vmatprep.subr.bf16.mxu1 %v1075_v50 }
 0x109   :  { %946 = vmatpush3.bf16.msra.mxu1 %v1076_v51 }
 0x10a   :  { %947 = vmatprep.subr.bf16.mxu1 %v1077_v52 }
 0x10d   :  { %948 = vmatpush3.bf16.msra.mxu1 %v1078_v53 }
 0x1b0   :  { %v392_v40 = vpop.f32.mrf.mxu1 }
 0x1b1   :  { %v393_v41 = vadd.f32 %v392_v40, %v191_v38 }
 0x1b2   :  { %v394_v42 = vpop.f32.mrf.mxu1 }
 0x1b3   :  { %v395_v43 = vadd.f32 %v394_v42, %v195_v39  ;;  %v399_v44 = vmax.f32 %v393_v41, 0.0 }
 0x1b4   :  { %v396_v45 = vpop.f32.mrf.mxu1 }
 0x1b5   :  { %v400_v46 = vmax.f32 %v395_v43, 0.0  ;;  %v401_v49 = vpack.c.bf16 %v399_v44, %v399_v44 }
 0x1b6   :  { %v397_v47 = vpop.f32.mrf.mxu1 }
 0x1b7   :  { %v402_v48 = vpack.c.bf16 %v400_v46, %v400_v46 }
 0x1b9   :  { %639 = vmatprep.mubr.bf16.mxu0 %v402_v48 }
 0x1ba   :  { %640 = vmatmul.mubr.bf16.vlgmr.msra.gmra.mxu0 %v401_v49 }
 0x27a   :  { %v641_v57 = vpop.f32.mrf.mxu0 }
 0x27b   :  { %v642_v58 = vadd.f32 %v641_v57, %v440_v55 }
 0x27c   :  { %v643_v59 = vpop.f32.mrf.mxu0 }
 0x27d   :  { %v644_v60 = vadd.f32 %v643_v59, %v444_v56  ;;  %v648_v61 = vmax.f32 %v642_v58, 0.0 }
 0x27e   :  { %v645_v62 = vpop.f32.mrf.mxu0 }
 0x27f   :  { %v649_v63 = vmax.f32 %v644_v60, 0.0  ;;  %v650_v2 = vpack.c.bf16 %v648_v61, %v648_v61 }
 0x280   :  { %v646_v0 = vpop.f32.mrf.mxu0 }
 0x281   :  { %v651_v1 = vpack.c.bf16 %v649_v63, %v649_v63 }
 0x283   :  { %819 = vmatprep.mubr.bf16.mxu1 %v651_v1 }
 0x284   :  { %820 = vmatmul.mubr.bf16.vlgmr.msra.gmra.mxu1 %v650_v2 }
 0x344   :  { %v949_v3 = vpop.f32.mrf.mxu1 }
 0x346   :  { %v950_v5 = vpop.f32.mrf.mxu1 }
 0x347   :  { %v951_v6 = vadd.f32 %v950_v5, %v949_v3 }
 0x348   :  { %v952_v7 = vpop.f32.mrf.mxu1 }
 0x349   :  { %v822_v8 = vadd.f32 %v951_v6, %v916_v4 }
 0x34a   :  { %v953_v9 = vpop.f32.mrf.mxu1 }
 0x34b   :  { %1079 = vtanh.f32 %v822_v8 }
 0x358   :  { %v1080_v10 = vpop.eup %1079 }
 0x359   :  { %829 = vst.msk [vmem:[#allocation7] sm:$0xff] %vm828_vm2, %v1080_v10 }
 0x35a   :  { %1132 = shalt.err (!%p1129_p0)
}
 0x35b   :  { %839 = dma.vmem_to_hbm [thread:$0]  %s837_s17, 128, %s1306_s9, [#allocation4]  }
 0x35c   :  { %1145 = dma.done.wait [#allocation4], 128  }
 0x35d   :  { %1146 = vsyncadd [#allocation4], 4294967168 }
 0x35e   :  { %843 = vsyncpa [#allocation3], 1 }
 0x35f   :  { %844 = vsyncpa [#allocation6], 1 }
 0x360   :  { %845 = vsyncpa [#allocation4], 1 }

</bundles_post_ra>
